<compile_context>
chip_gen: v7x
topology: tpu7x:2x2x1
jax: 0.10.0
libtpu: 0.0.40
codegen_flags: <defaults>
</compile_context>

<pallas_src>
import jax
import jax.numpy as jnp
from jax.experimental import pallas as pl
from jax.experimental.pallas import tpu as pltpu


BN_EPS = 1e-5


def _mlp_kernel(x_ref, w_ref, b_ref, out_ref):
    """Fused eval-mode MLP forward; all operands resident in VMEM.

    x_ref   : [TB, F]        unpadded input features (f32 by contract)
    w_ref   : [L+1, N, N]    stacked folded weights, layout [in, out]
                             (layer 0's input dim zero-padded to N,
                              final layer's output dim zero-padded to N)
    b_ref   : [L+1, 1, N]    stacked folded biases (final bias zero-padded)
    out_ref : [TB, O]        logits
    """
    in_f = x_ref.shape[1]
    n_layers = w_ref.shape[0]          # L hidden layers + 1 final layer
    out_dim = out_ref.shape[1]

    # First hidden layer: static slice of layer 0's weight avoids padding x
    # in the wrapper (no extra XLA op / HBM round-trip).
    h = jnp.dot(x_ref[...], w_ref[0, :in_f, :], preferred_element_type=jnp.float32)
    h = jnp.maximum(h + b_ref[0], 0.0)            # folded-BN bias add + ReLU

    # Remaining hidden layers (static unroll; layer count known at trace time).
    for l in range(1, n_layers - 1):
        h = jnp.dot(h, w_ref[l], preferred_element_type=jnp.float32)
        h = jnp.maximum(h + b_ref[l], 0.0)
        # Dropout: identity in eval mode.

    # Final Linear (stacked as the last layer; no BN / ReLU / dropout).
    y = jnp.dot(h, w_ref[n_layers - 1], preferred_element_type=jnp.float32)
    y = y + b_ref[n_layers - 1]
    # Output last dim (3) is not lane-dense -> masked store; negligible at this
    # scale. Fuse downstream softmax/argmax here if writeback ever matters.
    out_ref[...] = y[:, :out_dim]


def init_params(key, input_feature, hidden_layer, output, neurons_per_layer):
    """Deterministic synthetic parameters (shapes match the torch module)."""
    params = []
    in_f = input_feature
    for _ in range(hidden_layer):
        key, kw, kb = jax.random.split(key, 3)
        scale = 1.0 / jnp.sqrt(jnp.float32(in_f))
        w = jax.random.uniform(
            kw, (neurons_per_layer, in_f), jnp.float32, -scale, scale
        )  # torch Linear weight layout [out, in]
        b = jax.random.uniform(kb, (neurons_per_layer,), jnp.float32, -scale, scale)
        gamma = jnp.ones((neurons_per_layer,), jnp.float32)
        beta = jnp.zeros((neurons_per_layer,), jnp.float32)
        running_mean = jnp.zeros((neurons_per_layer,), jnp.float32)
        running_var = jnp.ones((neurons_per_layer,), jnp.float32)
        params.append((w, b, gamma, beta, running_mean, running_var))
        in_f = neurons_per_layer

    key, kw, kb = jax.random.split(key, 3)
    scale = 1.0 / jnp.sqrt(jnp.float32(neurons_per_layer))
    wf = jax.random.uniform(kw, (output, neurons_per_layer), jnp.float32, -scale, scale)
    bf = jax.random.uniform(kb, (output,), jnp.float32, -scale, scale)
    return params, (wf, bf)


def fold_and_pack(hidden_params, final_params):
    """One-time parameter prep (NOT per forward call):
    fold eval-mode BN into each Linear, transpose to [in, out], zero-pad the
    first layer's input dim and the final layer's output dim to N, and stack
    everything (hidden + final) into ONE weight operand and ONE bias operand."""
    n = hidden_params[0][0].shape[0]  # neurons_per_layer
    ws, bs = [], []
    for (w, b, gamma, beta, mean, var) in hidden_params:
        s = gamma * jax.lax.rsqrt(var + BN_EPS)            # [out], f32 fold
        w_t = w.T * s[None, :]                             # [in, out]
        b_f = (b - mean) * s + beta                        # [out]
        in_f = w_t.shape[0]
        if in_f < n:                                       # pad first layer to [N, N]
            w_t = jnp.pad(w_t, ((0, n - in_f), (0, 0)))
        ws.append(w_t)
        bs.append(b_f)

    wf, bf = final_params
    o = wf.shape[0]
    assert o <= n, "output dim must not exceed neurons_per_layer for stacking"
    wf_t = wf.T                                            # [N, O]
    if o < n:                                              # pad final layer to [N, N]
        wf_t = jnp.pad(wf_t, ((0, 0), (0, n - o)))
        bf = jnp.pad(bf, (0, n - o))
    ws.append(wf_t)
    bs.append(bf)

    w_all = jnp.stack(ws)                                  # [L+1, N, N]
    b_all = jnp.stack(bs)[:, None, :]                      # [L+1, 1, N]
    return w_all, b_all


def iris_mlp_forward(x, w_all, b_all, out_dim, *, batch_block=None):
    """Call the fused kernel. x must be f32 (explicit dtype contract).

    batch_block: optional tile size over the batch axis (must divide B and be a
    multiple of 8). Use for large B to amortize fixed cost and (on v7x) shard
    grid steps across both TensorCores. Default: single grid step (Iris scale).
    """
    assert x.dtype == jnp.float32, "kernel contract: f32 activations"
    B, in_f = x.shape
    n_layers, n, _ = w_all.shape

    tb = B if batch_block is None else batch_block
    assert B % tb == 0, "batch_block must divide the batch size"
    grid = (B // tb,)

    flops = 2 * B * n * (in_f + (n_layers - 1) * n)
    bytes_accessed = 4 * (x.size + w_all.size + b_all.size + B * out_dim)
    cost = pl.CostEstimate(
        flops=flops, transcendentals=0, bytes_accessed=bytes_accessed
    )

    return pl.pallas_call(
        _mlp_kernel,
        out_shape=jax.ShapeDtypeStruct((B, out_dim), jnp.float32),
        grid=grid,
        in_specs=[
            pl.BlockSpec((tb, in_f), lambda i: (i, 0)),
            pl.BlockSpec((n_layers, n, n), lambda i: (0, 0, 0)),  # constant across grid
            pl.BlockSpec((n_layers, 1, n), lambda i: (0, 0, 0)),  # constant across grid
        ],
        out_specs=pl.BlockSpec((tb, out_dim), lambda i: (i, 0)),
        compiler_params=pltpu.CompilerParams(
            dimension_semantics=("parallel",),  # uses both TCs on v7x at large B
        ),
        cost_estimate=cost,
    )(x, w_all, b_all)


if __name__ == "__main__":
    # Iris-like configuration: 4 features -> 3 hidden layers of 32 -> 3 classes.
    INPUT_FEATURE = 4
    HIDDEN_LAYER = 3
    OUTPUT = 3
    NEURONS = 32
    BATCH = 8

    key = jax.random.PRNGKey(0)
    key, kx = jax.random.split(key)
    x = jax.random.normal(kx, (BATCH, INPUT_FEATURE), jnp.float32)

    hidden_params, final_params = init_params(
        key, INPUT_FEATURE, HIDDEN_LAYER, OUTPUT, NEURONS
    )

    # One-time prep (fold BN, transpose, pad, stack hidden + final) — outside
    # the per-call path.
    w_all, b_all = fold_and_pack(hidden_params, final_params)

    out = iris_mlp_forward(x, w_all, b_all, OUTPUT)
    jax.block_until_ready(out)

    # Pure-JAX reference with the ORIGINAL (unfolded) eval-mode semantics.
    h = x
    for (w, b, gamma, beta, mean, var) in hidden_params:
        h = h @ w.T + b
        h = (h - mean) * jax.lax.rsqrt(var + BN_EPS) * gamma + beta
        h = jnp.maximum(h, 0.0)
    ref = h @ final_params[0].T + final_params[1]

    assert out.shape == (BATCH, OUTPUT)
    assert jnp.allclose(out, ref, atol=1e-5, rtol=1e-4), (
        float(jnp.max(jnp.abs(out - ref)))
    )

    print("KERNEL_OK")
</pallas_src>

<mosaic_0001>
module attributes {stable_mosaic.version = 11 : i64} {
  func.func @_mlp_kernel(%arg0: i32, %arg1: memref<8x4xf32, #tpu.memory_space<vmem>>, %arg2: memref<4x32x32xf32, #tpu.memory_space<vmem>>, %arg3: memref<4x1x32xf32, #tpu.memory_space<vmem>>, %arg4: memref<8x3xf32, #tpu.memory_space<vmem>>) attributes {dimension_semantics = [#tpu.dimension_semantics<parallel>], iteration_bounds = array<i64: 1>, scalar_prefetch = 0 : i64, scratch_operands = 0 : i64, tpu.core_type = #tpu.core_type<tc>, window_params = [{transform_indices = @transform_0, window_bounds = array<i64: 8, 4>}, {pipeline_mode = #tpu.pipeline_mode<synchronous>, transform_indices = @transform_1, window_bounds = array<i64: 4, 32, 32>}, {pipeline_mode = #tpu.pipeline_mode<synchronous>, transform_indices = @transform_2, window_bounds = array<i64: 4, 1, 32>}, {transform_indices = @transform_3, window_bounds = array<i64: 8, 3>}]} {
    %c0 = arith.constant 0 : index
    %c0_0 = arith.constant 0 : index
    %0 = vector.load %arg1[%c0, %c0_0] : memref<8x4xf32, #tpu.memory_space<vmem>>, vector<8x4xf32>
    %c0_1 = arith.constant 0 : index
    %c0_2 = arith.constant 0 : index
    %c0_3 = arith.constant 0 : index
    %1 = vector.load %arg2[%c0_1, %c0_2, %c0_3] : memref<4x32x32xf32, #tpu.memory_space<vmem>>, vector<1x4x32xf32>
    %2 = vector.shape_cast %1 : vector<1x4x32xf32> to vector<4x32xf32>
    %cst = arith.constant dense<0.000000e+00> : vector<8x32xf32>
    %3 = tpu.matmul %0, %2, %cst {dimension_numbers = #tpu.dot_dimension_numbers<[1], [0], [0], [1], [0, 0, 1, 1], [], []>} : vector<8x4xf32>, vector<4x32xf32>, vector<8x32xf32> -> vector<8x32xf32>
    %c0_4 = arith.constant 0 : index
    %c0_5 = arith.constant 0 : index
    %c0_6 = arith.constant 0 : index
    %4 = vector.load %arg3[%c0_4, %c0_5, %c0_6] : memref<4x1x32xf32, #tpu.memory_space<vmem>>, vector<1x1x32xf32>
    %5 = vector.shape_cast %4 : vector<1x1x32xf32> to vector<1x32xf32>
    %6 = vector.broadcast %5 : vector<1x32xf32> to vector<8x32xf32>
    %7 = arith.addf %3, %6 : vector<8x32xf32>
    %cst_7 = arith.constant 0.000000e+00 : f32
    %8 = vector.broadcast %cst_7 : f32 to vector<8x32xf32>
    %9 = arith.maximumf %7, %8 : vector<8x32xf32>
    %c1 = arith.constant 1 : index
    %c0_8 = arith.constant 0 : index
    %c0_9 = arith.constant 0 : index
    %10 = vector.load %arg2[%c1, %c0_8, %c0_9] : memref<4x32x32xf32, #tpu.memory_space<vmem>>, vector<1x32x32xf32>
    %11 = vector.shape_cast %10 : vector<1x32x32xf32> to vector<32x32xf32>
    %cst_10 = arith.constant dense<0.000000e+00> : vector<8x32xf32>
    %12 = tpu.matmul %9, %11, %cst_10 {dimension_numbers = #tpu.dot_dimension_numbers<[1], [0], [0], [1], [0, 0, 1, 1], [], []>} : vector<8x32xf32>, vector<32x32xf32>, vector<8x32xf32> -> vector<8x32xf32>
    %c1_11 = arith.constant 1 : index
    %c0_12 = arith.constant 0 : index
    %c0_13 = arith.constant 0 : index
    %13 = vector.load %arg3[%c1_11, %c0_12, %c0_13] : memref<4x1x32xf32, #tpu.memory_space<vmem>>, vector<1x1x32xf32>
    %14 = vector.shape_cast %13 : vector<1x1x32xf32> to vector<1x32xf32>
    %15 = vector.broadcast %14 : vector<1x32xf32> to vector<8x32xf32>
    %16 = arith.addf %12, %15 : vector<8x32xf32>
    %cst_14 = arith.constant 0.000000e+00 : f32
    %17 = vector.broadcast %cst_14 : f32 to vector<8x32xf32>
    %18 = arith.maximumf %16, %17 : vector<8x32xf32>
    %c2 = arith.constant 2 : index
    %c0_15 = arith.constant 0 : index
    %c0_16 = arith.constant 0 : index
    %19 = vector.load %arg2[%c2, %c0_15, %c0_16] : memref<4x32x32xf32, #tpu.memory_space<vmem>>, vector<1x32x32xf32>
    %20 = vector.shape_cast %19 : vector<1x32x32xf32> to vector<32x32xf32>
    %cst_17 = arith.constant dense<0.000000e+00> : vector<8x32xf32>
    %21 = tpu.matmul %18, %20, %cst_17 {dimension_numbers = #tpu.dot_dimension_numbers<[1], [0], [0], [1], [0, 0, 1, 1], [], []>} : vector<8x32xf32>, vector<32x32xf32>, vector<8x32xf32> -> vector<8x32xf32>
    %c2_18 = arith.constant 2 : index
    %c0_19 = arith.constant 0 : index
    %c0_20 = arith.constant 0 : index
    %22 = vector.load %arg3[%c2_18, %c0_19, %c0_20] : memref<4x1x32xf32, #tpu.memory_space<vmem>>, vector<1x1x32xf32>
    %23 = vector.shape_cast %22 : vector<1x1x32xf32> to vector<1x32xf32>
    %24 = vector.broadcast %23 : vector<1x32xf32> to vector<8x32xf32>
    %25 = arith.addf %21, %24 : vector<8x32xf32>
    %cst_21 = arith.constant 0.000000e+00 : f32
    %26 = vector.broadcast %cst_21 : f32 to vector<8x32xf32>
    %27 = arith.maximumf %25, %26 : vector<8x32xf32>
    %c3 = arith.constant 3 : index
    %c0_22 = arith.constant 0 : index
    %c0_23 = arith.constant 0 : index
    %28 = vector.load %arg2[%c3, %c0_22, %c0_23] : memref<4x32x32xf32, #tpu.memory_space<vmem>>, vector<1x32x32xf32>
    %29 = vector.shape_cast %28 : vector<1x32x32xf32> to vector<32x32xf32>
    %cst_24 = arith.constant dense<0.000000e+00> : vector<8x32xf32>
    %30 = tpu.matmul %27, %29, %cst_24 {dimension_numbers = #tpu.dot_dimension_numbers<[1], [0], [0], [1], [0, 0, 1, 1], [], []>} : vector<8x32xf32>, vector<32x32xf32>, vector<8x32xf32> -> vector<8x32xf32>
    %c3_25 = arith.constant 3 : index
    %c0_26 = arith.constant 0 : index
    %c0_27 = arith.constant 0 : index
    %31 = vector.load %arg3[%c3_25, %c0_26, %c0_27] : memref<4x1x32xf32, #tpu.memory_space<vmem>>, vector<1x1x32xf32>
    %32 = vector.shape_cast %31 : vector<1x1x32xf32> to vector<1x32xf32>
    %33 = vector.broadcast %32 : vector<1x32xf32> to vector<8x32xf32>
    %34 = arith.addf %30, %33 : vector<8x32xf32>
    %35 = vector.extract_strided_slice %34 {offsets = [0, 0], sizes = [8, 3], strides = [1, 1]} : vector<8x32xf32> to vector<8x3xf32>
    %c0_28 = arith.constant 0 : index
    %c0_29 = arith.constant 0 : index
    %36 = vector.load %arg4[%c0_28, %c0_29] : memref<8x3xf32, #tpu.memory_space<vmem>>, vector<8x3xf32>
    tpu.vector_store %arg4[%c0_28, %c0_29], %35 {strides = array<i32>} : memref<8x3xf32, #tpu.memory_space<vmem>>, vector<8x3xf32>,
    return
  }
  func.func @transform_0(%arg0: i32) -> (i32, i32) {
    %c0_i32 = arith.constant 0 : i32
    %c0_i32_0 = arith.constant 0 : i32
    return %arg0, %c0_i32 : i32, i32
  }
  func.func @transform_1(%arg0: i32) -> (i32, i32, i32) {
    %c0_i32 = arith.constant 0 : i32
    %c0_i32_0 = arith.constant 0 : i32
    %c0_i32_1 = arith.constant 0 : i32
    %c0_i32_2 = arith.constant 0 : i32
    return %c0_i32, %c0_i32_0, %c0_i32_1 : i32, i32, i32
  }
  func.func @transform_2(%arg0: i32) -> (i32, i32, i32) {
    %c0_i32 = arith.constant 0 : i32
    %c0_i32_0 = arith.constant 0 : i32
    %c0_i32_1 = arith.constant 0 : i32
    %c0_i32_2 = arith.constant 0 : i32
    return %c0_i32, %c0_i32_0, %c0_i32_1 : i32, i32, i32
  }
  func.func @transform_3(%arg0: i32) -> (i32, i32) {
    %c0_i32 = arith.constant 0 : i32
    %c0_i32_0 = arith.constant 0 : i32
    return %arg0, %c0_i32 : i32, i32
  }
}

</mosaic_0001>

<bundles_post_ra>
// kernel: tpu_custom_call.1
= control target key start
LH: loop header
LB: loop body
LE: loop exit
PB: predicated region body
PF: predicated region fallthrough
CT: control target
= control target key end

     0   :  { %8 = vsyncpa [#allocation3], 0  ;;  %s499_s12 = smov [#allocation2]   ;;  %s562_s0 = inlined_call_operand.vmem [shape: f32[8,4], index: 0, kind: input, shape index: {}]   ;;  %s563_s1 = inlined_call_operand.hbm [shape: f32[4,32,32], index: 1, kind: input, shape index: {}]   ;;  %s564_s2 = inlined_call_operand.vmem [shape: f32[4,1,32], index: 2, kind: input, shape index: {}]   ;;  %s565_s3 = inlined_call_operand.vmem [shape: f32[8,3], index: 3, kind: output, shape index: {}]  }
   0x1   :  { %s16_s13 = sshll.u32 %s499_s12, 4  ;;  %s475_s16 = scalar_lea.hbm %s563_s1, 2048  ;;  %s17_s13 = int_to_ptr.vmem [resolvable:$true] %s16_s13 }
   0x2   :  { %p476_p0 = scmp.ne.s32.totalorder %s563_s1, %s475_s16  ;;  %p479_p1 = scmp.lt.u32.totalorder %s475_s16, %s563_s1 }
   0x4   :  { %p481_p2 = pnand %p479_p1, %p476_p0 }
   0x6   :  { %484 = shalt.err (!%p481_p2)
}
   0x7   :  { %s485_s21 = scalar_lea.vmem %s17_s13, 2048  ;;  %p490_p4 = scmp.lt.s32.totalorder %s17_s13, %s17_s13 }
   0x8   :  { %p486_p3 = scmp.ne.s32.totalorder %s17_s13, %s485_s21  ;;  %p491_p5 = scmp.lt.s32.totalorder %s485_s21, %s485_s21 }
   0xa   :  { %p492_p6 = por %p491_p5, %p490_p4 }
   0xc   :  { %p493_p7 = pnand %p492_p6, %p486_p3 }
   0xe   :  { %496 = shalt.err (!%p493_p7)
}
   0xf   :  { %s500_s22 = smov 128   ;;  %s501_s23 = smov 8  }
  0x10   :  { %22 = dma.hbm_to_vmem [thread:$0]  %s563_s1, 2048, %s17_s13, [#allocation3], %s500_s22, %s500_s22, %s501_s23  }
  0x11   :  { %497 = dma.done.wait [#allocation3], 2048  }
  0x12   :  { %498 = vsyncadd [#allocation3], 4294965248  ;;  %v502_v0 = vmov 0.0   ;;  %vm503_vm0 = vmmov 0   ;;  %v504_v1 = vmov 0.0|0.0   ;;  %vm41_vm1 = vcmask 1043456  }
  0x13   :  { %413 = vmatprep.subr.mxu0 %v502_v0  ;;  %415 = vmatprep.mubr.msk.f32.mxu0 %vm503_vm0, %v502_v0  ;;  %vm37_vm2 = vcmask 31744   ;;  %v29_v2 = vld [vmem:[#allocation2] sm:$0xf]  ;;  %v118_v5 = vld [vmem:[#allocation2 + $0x28] sm:$0xff]  ;;  %v119_v7 = vld [vmem:[#allocation2 + $0x30] sm:$0xff]  ;;  %vm129_vm3 = vcmask 261120  }
  0x14   :  { %451 = vmatprep.subr.bf16.mxu1 %v504_v1  ;;  %426 = vmatprep.mubr.msk.f32.mxu1 %vm503_vm0, %v502_v0  ;;  %v28_v3 = vld [vmem:[%s562_s0] sm:$0xff]  ;;  %v120_v8 = vld [vmem:[#allocation2 + $0x38] sm:$0xff]  ;;  %v206_v11 = vld [vmem:[#allocation2 + $0x48] sm:$0xff]  ;;  %vm377_vm4 = vcmask 23552  }
  0x15   :  { %v117_v4 = vld [vmem:[#allocation2 + $0x20] sm:$0xff]  ;;  %414 = vmatpush3.msk.msra.mxu0 %vm41_vm1, %v29_v2  ;;  %v455_v9 = vpack.c.bf16 %v120_v8, %v119_v7  ;;  %v207_v18 = vld [vmem:[#allocation2 + $0x50] sm:$0xff]  ;;  %v208_v19 = vld [vmem:[#allocation2 + $0x58] sm:$0xff] }
  0x16   :  { %416 = vmatmul.mubr.msk.f32.vlgmr.msra.gmra.mrb[0].mxu0 %vm37_vm2, %v28_v3  ;;  %v452_v6 = vpack.c.bf16 %v118_v5, %v117_v4  ;;  %457 = vmatprep.subr.bf16.mxu0 %v504_v1  ;;  %v205_v10 = vld [vmem:[#allocation2 + $0x40] sm:$0xff]  ;;  %v461_v20 = vpack.c.bf16 %v208_v19, %v207_v18  ;;  %v293_v22 = vld [vmem:[#allocation2 + $0x68] sm:$0xff]  ;;  %v294_v29 = vld [vmem:[#allocation2 + $0x70] sm:$0xff] }
  0x17   :  { %437 = vmatprep.mubr.msk.f32.mxu0 %vm503_vm0, %v502_v0  ;;  %v458_v12 = vpack.c.bf16 %v206_v11, %v205_v10  ;;  %v384_v13 = vld [vmem:[%s564_s2] ss:$0 sm:$0xff]  ;;  %v388_v24 = vld [vmem:[%s564_s2 + $0x1] ss:$0 sm:$0xff]  ;;  %v295_v30 = vld [vmem:[#allocation2 + $0x78] sm:$0xff] }
  0x18   :  { %453 = vmatpush3.bf16.msra.mxu1 %v452_v6  ;;  %v292_v21 = vld [vmem:[#allocation2 + $0x60] sm:$0xff]  ;;  %v467_v31 = vpack.c.bf16 %v295_v30, %v294_v29 }
  0x19   :  { %454 = vmatprep.subr.bf16.mxu1 %v504_v1  ;;  %459 = vmatpush3.bf16.msra.mxu0 %v458_v12  ;;  %v464_v23 = vpack.c.bf16 %v293_v22, %v292_v21  ;;  %v391_v32 = vld [vmem:[%s564_s2 + $0x2] ss:$0 sm:$0xff]  ;;  %v394_v37 = vld [vmem:[%s564_s2 + $0x3] ss:$0 sm:$0xff] }
  0x1a   :  { %460 = vmatprep.subr.bf16.mxu0 %v504_v1 }
  0x1c   :  { %456 = vmatpush3.bf16.msra.mxu1 %v455_v9 }
  0x1d   :  { %463 = vmatprep.subr.bf16.mxu1 %v504_v1  ;;  %462 = vmatpush3.bf16.msra.mxu0 %v461_v20 }
  0xe9   :  { %v111_v14 = vpop.f32.mrb[0].mxu0 }
  0xea   :  { %v112_v15 = vadd.f32 %v384_v13, %v111_v14  ;;  %v417_v16 = vpop.f32.mrb[1].mxu0 }
  0xec   :  { %v115_v17 = vmax.f32 %v112_v15, 0.0 }
  0xee   :  { %427 = vmatmul.mubr.msk.f32.vlgmr.msra.gmra.mrb[0].mxu1 %vm129_vm3, %v115_v17 }
  0xef   :  { %448 = vmatprep.mubr.msk.f32.mxu1 %vm503_vm0, %v502_v0  ;;  %465 = vmatpush3.bf16.msra.mxu1 %v464_v23 }
  0xf0   :  { %466 = vmatprep.subr.bf16.mxu1 %v504_v1 }
  0xf3   :  { %468 = vmatpush3.bf16.msra.mxu1 %v467_v31 }
 0x1c1   :  { %v199_v25 = vpop.f32.mrb[0].mxu1 }
 0x1c2   :  { %v200_v26 = vadd.f32 %v388_v24, %v199_v25  ;;  %v428_v27 = vpop.f32.mrb[1].mxu1 }
 0x1c4   :  { %v203_v28 = vmax.f32 %v200_v26, 0.0 }
 0x1c6   :  { %438 = vmatmul.mubr.msk.f32.vlgmr.msra.gmra.mrb[2].mxu0 %vm129_vm3, %v203_v28 }
 0x299   :  { %v286_v33 = vpop.f32.mrb[2].mxu0 }
 0x29a   :  { %v287_v34 = vadd.f32 %v391_v32, %v286_v33  ;;  %v439_v35 = vpop.f32.mrb[3].mxu0 }
 0x29c   :  { %v290_v36 = vmax.f32 %v287_v34, 0.0 }
 0x29e   :  { %449 = vmatmul.mubr.msk.f32.vlgmr.msra.gmra.mrb[2].mxu1 %vm129_vm3, %v290_v36 }
 0x371   :  { %v373_v38 = vpop.f32.mrb[2].mxu1 }
 0x372   :  { %v374_v39 = vadd.f32 %v394_v37, %v373_v38  ;;  %v450_v40 = vpop.f32.mrb[3].mxu1 }
 0x374   :  { %378 = vst.msk [vmem:[%s565_s3] sm:$0xff] %vm377_vm4, %v374_v39 }
 0x375   :  { %383 = vsyncpa [#allocation3], 1 }

</bundles_post_ra>
